<compile_context>
chip_gen: v7x
topology: tpu7x:2x2x1
jax: 0.10.0
libtpu: 0.0.40
codegen_flags: <defaults>
</compile_context>

<pallas_src>
import jax
import jax.numpy as jnp
from jax import lax
from jax.experimental import pallas as pl
from jax.experimental.pallas import tpu as pltpu


def _sigmoid_exact(v):
    return 1.0 / (1.0 + jnp.exp(-v))


def _sigmoid_approx(v):
    # exp on the EUP + approx reciprocal on the EUP -> no VALU divide/refine.
    return pl.reciprocal(1.0 + jnp.exp(-v), approx=True)


# --------------------------------------------------------------------------
# Kernel
# --------------------------------------------------------------------------
def triplane_attention_kernel(x_ref, w1t_ref, w2t_ref, convmat_ref, out_ref):
    """x_ref/out_ref: (T, C, HW) f32 (natural NCHW layout, HW lane-minor);
    w1t: (C, hid); w2t: (hid, C); convmat: (2*HW, HW) bf16 banded 7x7 conv."""
    T, C, HW = x_ref.shape
    inv_hw = 1.0 / float(HW)
    inv_c = 1.0 / float(C)

    # ---- Channel attention -------------------------------------------------
    # Whole-block lane reductions -> (T, C); no per-channel slicing / concat.
    pooled_avg = jnp.sum(x_ref[...], axis=-1) * inv_hw            # (T, C)
    pooled_max = jnp.max(x_ref[...], axis=-1)                     # (T, C)

    # Shared MLP applied once to the stacked [avg; max] operand.
    pooled = jnp.concatenate([pooled_avg, pooled_max], axis=0)    # (2T, C)
    h = jnp.maximum(
        jnp.dot(pooled, w1t_ref[...], preferred_element_type=jnp.float32), 0.0)
    o = jnp.dot(h, w2t_ref[...], preferred_element_type=jnp.float32)  # (2T, C)
    ca = _sigmoid_exact(o[:T] + o[T:])                            # (T, C)
    ca_l = ca[:, :, None]                                         # (T, C, 1)

    # ---- Spatial attention -------------------------------------------------
    # Channel mean / max of x1 = ca * x, streamed (x1 never kept live, never
    # stored and read back).
    ch_mean = jnp.sum(x_ref[...] * ca_l, axis=1) * inv_c          # (T, HW)
    ch_max = jnp.max(x_ref[...] * ca_l, axis=1)                   # (T, HW)

    # 7x7 'same' conv over [mean | max] == one MXU matmul against the
    # precomputed banded matrix (bf16 operands, f32 accumulation).
    sp = jnp.concatenate([ch_mean, ch_max], axis=-1)              # (T, 2*HW)
    conv = jnp.dot(sp.astype(jnp.bfloat16), convmat_ref[...],
                   preferred_element_type=jnp.float32)            # (T, HW)
    sa = _sigmoid_approx(conv)                                    # (T, HW)

    # ---- Single full-tile store of the final output ------------------------
    out_ref[...] = x_ref[...] * ca_l * sa[:, None, :]


# --------------------------------------------------------------------------
# Host-side glue
# --------------------------------------------------------------------------
def _build_conv_matrix(conv_w, H, W):
    """Unroll a 7x7 stride-1 'same' conv (2 -> 1 channels, no bias) into a
    (2*H*W, H*W) bf16 matrix so the kernel runs it as a single MXU matmul.
    # TODO(synk): O((H*W)^2) memory — for planes much larger than 16x16 replace
    # with a direct 7x7 stencil (pltpu.roll / shifted adds) to stay inside
    # v7x's 64 MiB VMEM and avoid the ~80% zero taps.
    """
    K = conv_w[0].astype(jnp.float32)                      # (2, kh, kw)
    kh, kw = int(K.shape[1]), int(K.shape[2])
    ph, pw = kh // 2, kw // 2
    dh = jnp.arange(H)[:, None] - jnp.arange(H)[None, :] + ph      # (Hin, Hout)
    dw = jnp.arange(W)[:, None] - jnp.arange(W)[None, :] + pw      # (Win, Wout)
    vh = ((dh >= 0) & (dh < kh)).astype(jnp.float32)
    vw = ((dw >= 0) & (dw < kw)).astype(jnp.float32)
    dhc = jnp.clip(dh, 0, kh - 1)
    dwc = jnp.clip(dw, 0, kw - 1)
    # M[c, hi, wi, ho, wo] = K[c, hi-ho+ph, wi-wo+pw] when the tap lies inside
    # the kernel window; zero padding is implicit (hi, wi range over the image).
    Kg = K[:, dhc[:, None, :, None], dwc[None, :, None, :]]        # (2,Hin,Win,Hout,Wout)
    M = Kg * vh[None, :, None, :, None] * vw[None, None, :, None, :]
    return M.reshape(2 * H * W, H * W).astype(jnp.bfloat16)


def tri_plane_attention(x, w1, w2, conv_w, tile_n=None):
    """TriPlaneAttention.forward.  x: (N, C, H, W); w1: (hid, C); w2: (C, hid);
    conv_w: (1, 2, 7, 7).  Returns (N, C, H, W) float32."""
    N, C, H, W = x.shape
    HW = H * W
    hid = w1.shape[0]

    # Batch tile: <= 8 keeps the streamed live set within the vreg file, and
    # tile_n <= ceil(N/2) guarantees >= 2 grid steps (v7x: 2 TensorCores).
    if tile_n is None:
        tile_n = max(1, min(8, pl.cdiv(N, 2)))
    grid_n = pl.cdiv(N, tile_n)
    n_pad = grid_n * tile_n

    # Natural (N, C, H*W) layout: reshape is a free metadata change — no host
    # transposes, no extra HBM passes over x / out.
    x3 = x.astype(jnp.float32).reshape(N, C, HW)
    if n_pad != N:
        x3 = jnp.pad(x3, ((0, n_pad - N), (0, 0), (0, 0)))

    w1t = jnp.transpose(w1.astype(jnp.float32))             # (C, hid)
    w2t = jnp.transpose(w2.astype(jnp.float32))             # (hid, C)
    convmat = _build_conv_matrix(conv_w, H, W)               # (2*HW, HW) bf16

    out3 = pl.pallas_call(
        triplane_attention_kernel,
        out_shape=jax.ShapeDtypeStruct((n_pad, C, HW), jnp.float32),
        grid_spec=pltpu.PrefetchScalarGridSpec(
            num_scalar_prefetch=0,
            grid=(grid_n,),
            in_specs=[
                # Last two block dims equal the full array dims -> legal per
                # the (8,128) rule; leading batch dim is freely tileable.
                pl.BlockSpec((tile_n, C, HW), lambda i: (i, 0, 0)),
                pl.BlockSpec((C, hid), lambda i: (0, 0)),
                pl.BlockSpec((hid, C), lambda i: (0, 0)),
                pl.BlockSpec((2 * HW, HW), lambda i: (0, 0)),
            ],
            out_specs=pl.BlockSpec((tile_n, C, HW), lambda i: (i, 0, 0)),
        ),
        # Defaults fit VMEM comfortably at tile_n <= 8 on v5e/v6e/v7x; set
        # vmem_limit_bytes here only if tile_n is raised substantially.
        compiler_params=pltpu.CompilerParams(
            dimension_semantics=("parallel",)),
    )(x3, w1t, w2t, convmat)

    return out3[:N].reshape(N, C, H, W)


# --------------------------------------------------------------------------
# Pure-JAX reference (independent of the kernel's banded-matmul trick)
# --------------------------------------------------------------------------
def _reference_forward(x, w1, w2, conv_w):
    hp = lax.Precision.HIGHEST
    avg = jnp.mean(x, axis=(2, 3))                                   # (N, C)
    mx = jnp.max(x, axis=(2, 3))                                     # (N, C)

    def mlp(p):
        h = jax.nn.relu(jnp.dot(p, w1.T, precision=hp))
        return jnp.dot(h, w2.T, precision=hp)

    ca = jax.nn.sigmoid(mlp(avg) + mlp(mx))[:, :, None, None]        # (N,C,1,1)
    x1 = ca * x
    avg_c = jnp.mean(x1, axis=1, keepdims=True)
    max_c = jnp.max(x1, axis=1, keepdims=True)
    sp = jnp.concatenate([avg_c, max_c], axis=1)                     # (N,2,H,W)
    conv = lax.conv_general_dilated(sp, conv_w, window_strides=(1, 1),
                                    padding=((3, 3), (3, 3)), precision=hp)
    sa = jax.nn.sigmoid(conv)                                        # (N,1,H,W)
    return sa * x1


if __name__ == "__main__":
    key = jax.random.PRNGKey(0)
    k_x, k_w1, k_w2, k_c = jax.random.split(key, 4)

    # Module config: planes=20, ratio=5 -> hidden=4; input (2, 20, 16, 16).
    N, C, H, W = 2, 20, 16, 16
    ratio = 5
    hid = C // ratio

    x = jax.random.normal(k_x, (N, C, H, W), jnp.float32)
    w1 = jax.random.normal(k_w1, (hid, C), jnp.float32) * 0.1         # Conv2d(C,hid,1) weight
    w2 = jax.random.normal(k_w2, (C, hid), jnp.float32) * 0.1         # Conv2d(hid,C,1) weight
    conv_w = jax.random.normal(k_c, (1, 2, 7, 7), jnp.float32) * 0.1  # SpatialAttention conv

    out = tri_plane_attention(x, w1, w2, conv_w)
    out = jax.block_until_ready(out)
    assert out.shape == (N, C, H, W), out.shape

    ref = _reference_forward(x, w1, w2, conv_w)
    err = float(jnp.max(jnp.abs(out - ref)))
    # Kernel uses bf16 MXU operands for the conv matmul and the EUP approx
    # reciprocal for the spatial sigmoid; reference is Precision.HIGHEST f32,
    # so compare at ~1e-2 absolute.
    assert jnp.allclose(out, ref, atol=1e-2, rtol=5e-3), (
        f"mismatch vs reference, max err {err}")

    print("KERNEL_OK")
</pallas_src>

<mosaic_0001>
module attributes {stable_mosaic.version = 11 : i64} {
  func.func @triplane_attention_kernel(%arg0: i32, %arg1: memref<1x20x256xf32, #tpu.memory_space<vmem>>, %arg2: memref<20x4xf32, #tpu.memory_space<vmem>>, %arg3: memref<4x20xf32, #tpu.memory_space<vmem>>, %arg4: memref<512x256xbf16, #tpu.memory_space<vmem>>, %arg5: memref<1x20x256xf32, #tpu.memory_space<vmem>>) attributes {dimension_semantics = [#tpu.dimension_semantics<parallel>], iteration_bounds = array<i64: 2>, scalar_prefetch = 0 : i64, scratch_operands = 0 : i64, tpu.core_type = #tpu.core_type<tc>, window_params = [{transform_indices = @transform_0, window_bounds = array<i64: 1, 20, 256>}, {pipeline_mode = #tpu.pipeline_mode<synchronous>, transform_indices = @transform_1, window_bounds = array<i64: 20, 4>}, {pipeline_mode = #tpu.pipeline_mode<synchronous>, transform_indices = @transform_2, window_bounds = array<i64: 4, 20>}, {pipeline_mode = #tpu.pipeline_mode<synchronous>, transform_indices = @transform_3, window_bounds = array<i64: 512, 256>}, {transform_indices = @transform_4, window_bounds = array<i64: 1, 20, 256>}]} {
    %c0 = arith.constant 0 : index
    %c0_0 = arith.constant 0 : index
    %c0_1 = arith.constant 0 : index
    %0 = vector.load %arg1[%c0, %c0_0, %c0_1] : memref<1x20x256xf32, #tpu.memory_space<vmem>>, vector<1x20x256xf32>
    %cst = arith.constant dense<0.000000e+00> : vector<1x20xf32>
    %1 = vector.multi_reduction <add>, %0, %cst [2] : vector<1x20x256xf32> to vector<1x20xf32>
    %cst_2 = arith.constant 3.906250e-03 : f32
    %2 = vector.broadcast %cst_2 : f32 to vector<1x20xf32>
    %3 = arith.mulf %1, %2 : vector<1x20xf32>
    %c0_3 = arith.constant 0 : index
    %c0_4 = arith.constant 0 : index
    %c0_5 = arith.constant 0 : index
    %4 = vector.load %arg1[%c0_3, %c0_4, %c0_5] : memref<1x20x256xf32, #tpu.memory_space<vmem>>, vector<1x20x256xf32>
    %cst_6 = arith.constant dense<0xFF800000> : vector<1x20xf32>
    %5 = vector.multi_reduction <maximumf>, %4, %cst_6 [2] : vector<1x20x256xf32> to vector<1x20xf32>
    %6 = tpu.concatenate %3, %5 in 0 : vector<1x20xf32>, vector<1x20xf32> -> vector<2x20xf32>
    %c0_7 = arith.constant 0 : index
    %c0_8 = arith.constant 0 : index
    %7 = vector.load %arg2[%c0_7, %c0_8] : memref<20x4xf32, #tpu.memory_space<vmem>>, vector<20x4xf32>
    %cst_9 = arith.constant dense<0.000000e+00> : vector<2x4xf32>
    %8 = tpu.matmul %6, %7, %cst_9 {dimension_numbers = #tpu.dot_dimension_numbers<[1], [0], [0], [1], [0, 0, 1, 1], [], []>} : vector<2x20xf32>, vector<20x4xf32>, vector<2x4xf32> -> vector<2x4xf32>
    %cst_10 = arith.constant 0.000000e+00 : f32
    %9 = vector.broadcast %cst_10 : f32 to vector<2x4xf32>
    %10 = arith.maximumf %8, %9 : vector<2x4xf32>
    %c0_11 = arith.constant 0 : index
    %c0_12 = arith.constant 0 : index
    %11 = vector.load %arg3[%c0_11, %c0_12] : memref<4x20xf32, #tpu.memory_space<vmem>>, vector<4x20xf32>
    %cst_13 = arith.constant dense<0.000000e+00> : vector<2x20xf32>
    %12 = tpu.matmul %10, %11, %cst_13 {dimension_numbers = #tpu.dot_dimension_numbers<[1], [0], [0], [1], [0, 0, 1, 1], [], []>} : vector<2x4xf32>, vector<4x20xf32>, vector<2x20xf32> -> vector<2x20xf32>
    %13 = vector.extract_strided_slice %12 {offsets = [0, 0], sizes = [1, 20], strides = [1, 1]} : vector<2x20xf32> to vector<1x20xf32>
    %14 = vector.extract_strided_slice %12 {offsets = [1, 0], sizes = [1, 20], strides = [1, 1]} : vector<2x20xf32> to vector<1x20xf32>
    %15 = arith.addf %13, %14 : vector<1x20xf32>
    %cst_14 = arith.constant 0.000000e+00 : f32
    %16 = vector.broadcast %cst_14 : f32 to vector<1x20xf32>
    %17 = arith.subf %16, %15 : vector<1x20xf32>
    %18 = math.exp %17 : vector<1x20xf32>
    %cst_15 = arith.constant 1.000000e+00 : f32
    %19 = vector.broadcast %cst_15 : f32 to vector<1x20xf32>
    %20 = arith.addf %19, %18 : vector<1x20xf32>
    %cst_16 = arith.constant 1.000000e+00 : f32
    %21 = vector.broadcast %cst_16 : f32 to vector<1x20xf32>
    %22 = arith.divf %21, %20 : vector<1x20xf32>
    %23 = vector.shape_cast %22 : vector<1x20xf32> to vector<1x20x1xf32>
    %c0_17 = arith.constant 0 : index
    %c0_18 = arith.constant 0 : index
    %c0_19 = arith.constant 0 : index
    %24 = vector.load %arg1[%c0_17, %c0_18, %c0_19] : memref<1x20x256xf32, #tpu.memory_space<vmem>>, vector<1x20x256xf32>
    %25 = vector.broadcast %23 : vector<1x20x1xf32> to vector<1x20x256xf32>
    %26 = arith.mulf %24, %25 : vector<1x20x256xf32>
    %cst_20 = arith.constant dense<0.000000e+00> : vector<1x256xf32>
    %27 = vector.multi_reduction <add>, %26, %cst_20 [1] : vector<1x20x256xf32> to vector<1x256xf32>
    %cst_21 = arith.constant 5.000000e-02 : f32
    %28 = vector.broadcast %cst_21 : f32 to vector<1x256xf32>
    %29 = arith.mulf %27, %28 : vector<1x256xf32>
    %c0_22 = arith.constant 0 : index
    %c0_23 = arith.constant 0 : index
    %c0_24 = arith.constant 0 : index
    %30 = vector.load %arg1[%c0_22, %c0_23, %c0_24] : memref<1x20x256xf32, #tpu.memory_space<vmem>>, vector<1x20x256xf32>
    %31 = vector.broadcast %23 : vector<1x20x1xf32> to vector<1x20x256xf32>
    %32 = arith.mulf %30, %31 : vector<1x20x256xf32>
    %cst_25 = arith.constant dense<0xFF800000> : vector<1x256xf32>
    %33 = vector.multi_reduction <maximumf>, %32, %cst_25 [1] : vector<1x20x256xf32> to vector<1x256xf32>
    %34 = tpu.concatenate %29, %33 in 1 : vector<1x256xf32>, vector<1x256xf32> -> vector<1x512xf32>
    %35 = arith.truncf %34 : vector<1x512xf32> to vector<1x512xbf16>
    %c0_26 = arith.constant 0 : index
    %c0_27 = arith.constant 0 : index
    %36 = vector.load %arg4[%c0_26, %c0_27] : memref<512x256xbf16, #tpu.memory_space<vmem>>, vector<512x256xbf16>
    %cst_28 = arith.constant dense<0.000000e+00> : vector<1x256xf32>
    %37 = tpu.matmul %35, %36, %cst_28 {dimension_numbers = #tpu.dot_dimension_numbers<[1], [0], [0], [1], [0, 0, 1, 1], [], []>} : vector<1x512xbf16>, vector<512x256xbf16>, vector<1x256xf32> -> vector<1x256xf32>
    %cst_29 = arith.constant 0.000000e+00 : f32
    %38 = vector.broadcast %cst_29 : f32 to vector<1x256xf32>
    %39 = arith.subf %38, %37 : vector<1x256xf32>
    %40 = math.exp %39 : vector<1x256xf32>
    %cst_30 = arith.constant 1.000000e+00 : f32
    %41 = vector.broadcast %cst_30 : f32 to vector<1x256xf32>
    %42 = arith.addf %41, %40 : vector<1x256xf32>
    %43 = tpu.reciprocal %42 {approx = true} : vector<1x256xf32> -> vector<1x256xf32>
    %c0_31 = arith.constant 0 : index
    %c0_32 = arith.constant 0 : index
    %c0_33 = arith.constant 0 : index
    %44 = vector.load %arg1[%c0_31, %c0_32, %c0_33] : memref<1x20x256xf32, #tpu.memory_space<vmem>>, vector<1x20x256xf32>
    %45 = vector.broadcast %23 : vector<1x20x1xf32> to vector<1x20x256xf32>
    %46 = arith.mulf %44, %45 : vector<1x20x256xf32>
    %47 = vector.shape_cast %43 : vector<1x256xf32> to vector<1x1x256xf32>
    %48 = vector.broadcast %47 : vector<1x1x256xf32> to vector<1x20x256xf32>
    %49 = arith.mulf %46, %48 : vector<1x20x256xf32>
    %c0_34 = arith.constant 0 : index
    %c0_35 = arith.constant 0 : index
    %c0_36 = arith.constant 0 : index
    %50 = vector.load %arg5[%c0_34, %c0_35, %c0_36] : memref<1x20x256xf32, #tpu.memory_space<vmem>>, vector<1x20x256xf32>
    tpu.vector_store %arg5[%c0_34, %c0_35, %c0_36], %49 {strides = array<i32>} : memref<1x20x256xf32, #tpu.memory_space<vmem>>, vector<1x20x256xf32>,
    return
  }
  func.func @transform_0(%arg0: i32) -> (i32, i32, i32) {
    %c0_i32 = arith.constant 0 : i32
    %c0_i32_0 = arith.constant 0 : i32
    %c0_i32_1 = arith.constant 0 : i32
    return %arg0, %c0_i32, %c0_i32_0 : i32, i32, i32
  }
  func.func @transform_1(%arg0: i32) -> (i32, i32) {
    %c0_i32 = arith.constant 0 : i32
    %c0_i32_0 = arith.constant 0 : i32
    %c0_i32_1 = arith.constant 0 : i32
    return %c0_i32, %c0_i32_0 : i32, i32
  }
  func.func @transform_2(%arg0: i32) -> (i32, i32) {
    %c0_i32 = arith.constant 0 : i32
    %c0_i32_0 = arith.constant 0 : i32
    %c0_i32_1 = arith.constant 0 : i32
    return %c0_i32, %c0_i32_0 : i32, i32
  }
  func.func @transform_3(%arg0: i32) -> (i32, i32) {
    %c0_i32 = arith.constant 0 : i32
    %c0_i32_0 = arith.constant 0 : i32
    %c0_i32_1 = arith.constant 0 : i32
    return %c0_i32, %c0_i32_0 : i32, i32
  }
  func.func @transform_4(%arg0: i32) -> (i32, i32, i32) {
    %c0_i32 = arith.constant 0 : i32
    %c0_i32_0 = arith.constant 0 : i32
    %c0_i32_1 = arith.constant 0 : i32
    return %arg0, %c0_i32, %c0_i32_0 : i32, i32, i32
  }
}

</mosaic_0001>

<bundles_post_ra>
// kernel: tpu_custom_call.1
= control target key start
LH: loop header
LB: loop body
LE: loop exit
PB: predicated region body
PF: predicated region fallthrough
CT: control target
= control target key end

     0   :  { %9 = vsyncpa [#allocation3], 0  ;;  %s1392_s15 = smov 0   ;;  %s1548_s0 = inlined_call_operand.vmem [shape: f32[2,20,256], index: 0, kind: input, shape index: {}]   ;;  %s1549_s1 = inlined_call_operand.vmem [shape: f32[20,4], index: 1, kind: input, shape index: {}]   ;;  %s1550_s2 = inlined_call_operand.vmem [shape: f32[4,20], index: 2, kind: input, shape index: {}]   ;;  %s1551_s3 = inlined_call_operand.hbm [shape: bf16[512,256], index: 3, kind: input, shape index: {}]   ;;  %s1552_s4 = inlined_call_operand.vmem [shape: f32[2,20,256], index: 4, kind: output, shape index: {}]  }
   0x1 LB: > { %s1398_s16 = sadd.s32 4294967295, %s1359_s15   ;;  %p1086_p0 = scmp.ge.s32.totalorder %s1359_s15, 1  ;;  %s1359_s15 = sphi %s1392_s15, %s15_s15  }
   0x2   : > { %p135_p1 = scmp.lt.s32.totalorder %s1359_s15, 3  ;;  %s1361_s17 = smov [#allocation2]  }
   0x3   : > { %s153_s18 = sshll.u32 %s1361_s17, 4  ;;  %p1553_p3 = scmp.eq.s32.totalorder %s1398_s16, 0  ;;  %s154_s18 = int_to_ptr.vmem [resolvable:$true] %s153_s18 }
   0x4   : > { %p1402_p2 = pnand %p1086_p0, %p135_p1  ;;  %s1321_s23 = scalar_lea.hbm %s1551_s3, 8192 }
   0x5   : > { %p1322_p6 = scmp.ne.s32.totalorder %s1551_s3, %s1321_s23  ;;  %p1328_p10 = scmp.lt.u32.totalorder %s1321_s23, %s1551_s3 }
   0x6   : > { %s1555_s19 = scalar_select %p1402_p2, 1, 0 }
   0x7   : > { %p1193_p4 = pneg %p1402_p2 }
   0x9   : > { %p1411_p5 = pnand %p1553_p3, %p1193_p4 }
   0xb   : > { %p1323_p7 = pneg %p1411_p5 }
   0xd   : > { %p1324_p8 = pnand %p1323_p7, %p1322_p6 }
   0xf   : > { %p1325_p9 = pneg %p1324_p8 }
  0x11   : > { %p1330_p11 = pnand %p1328_p10, %p1325_p9 }
  0x13   : > { %1333 = shalt.err (!%p1330_p11)
}
  0x14   : > { %s1334_s28 = scalar_lea.vmem %s154_s18, 8192  ;;  %p1342_p1 = scmp.lt.s32.totalorder %s154_s18, %s154_s18 }
  0x15   : > { %p1335_p12 = scmp.ne.s32.totalorder %s154_s18, %s1334_s28  ;;  %p1343_p4 = scmp.lt.s32.totalorder %s1334_s28, %s1334_s28 }
  0x17   : > { %p1337_p13 = pnand %p1335_p12, %p1323_p7  ;;  %p1344_p3 = por %p1343_p4, %p1342_p1 }
  0x19   : > { %p1338_p0 = pneg %p1337_p13 }
  0x1b   : > { %p1345_p2 = pnand %p1344_p3, %p1338_p0 }
  0x1d   : > { %1348 = shalt.err (!%p1345_p2)
}
  0x1e   : > { %s1362_s29 = smov 128   ;;  %s1363_s30 = smov 8  }
  0x1f   : > { %1196 = dma.hbm_to_vmem [thread:$0]  (!%p1411_p5), %s1551_s3, 8192, %s154_s18, [#allocation3], %s1362_s29, %s1362_s29, %s1363_s30  }
  0x20   : > { %p1557_p6 = scmp.ne.s32.totalorder %s1555_s19, 0 }
  0x21   : > { %p1558_p8 = scmp.eq.s32.totalorder (!%p1557_p6), %s1398_s16, 0 }
  0x22   : > { %177 = sbr.rel (%p1557_p6) target bundleno = 1056 (0x420), region = 36 }
  0x29   : > { %1354 = dma.done.wait (%p1558_p8), [#allocation3], 8192   ;;  %p1559_p7 = pmov %p1558_p8 }
  0x2a   : > { %p203_p2 = scmp.lt.s32.totalorder %s1398_s16, 1  ;;  %vm225_vm0 = vcmask 1043456   ;;  %v289_v16 = vld [vmem:[%s1549_s1] sm:$0xff]  ;;  %v290_v17 = vld [vmem:[%s1549_s1 + $0x8] sm:$0xff]  ;;  %v1364_v19 = vmov 0.0|0.0   ;;  %v1365_v20 = vmov 0.0   ;;  %v248_v22 = vlaneseq }
  0x2b   : > { %1356 = vsyncadd (%p1559_p7), [#allocation3], 4294959104  ;;  %v1184_v18 = vpack.c.bf16 %v290_v17, %v289_v16  ;;  %1183 = vmatprep.subr.bf16.mxu0 %v1364_v19  ;;  %v291_v21 = vld [vmem:[%s1549_s1 + $0x10] sm:$0xf]  ;;  %1178 = vmatprep.subr.mxu1 %v1365_v20  ;;  %vm1366_vm1 = vmmov 0   ;;  %vm259_vm2 = vcmask 130112  }
  0x2c   : > { %s1561_s16 = smov (!%p203_p2, %s1398_s16), 1  ;;  %1175 = vmatprep.mubr.msk.f32.mxu0 %vm1366_vm1, %v1365_v20  ;;  %1180 = vmatprep.mubr.msk.f32.mxu1 %vm1366_vm1, %v1365_v20  ;;  %v249_v23 = vand.u32 127, %v248_v22  ;;  %v1485_v24 = vshrl.u32 %v248_v22, 7  ;;  %vm266_vm3 = vcmask 195712   ;;  %vm287_vm4 = vcmask 1040384  }
  0x2d   : > { %s1188_s7 = smul.u32 48, %s1561_s16  ;;  %1185 = vmatpush3.bf16.msra.mxu0 %v1184_v18  ;;  %vm292_vm5 = vcmask 162816   ;;  %v370_v50 = vld [vmem:[%s1550_s2] sm:$0xf]  ;;  %vm371_vm6 = vcmask 31744  }
  0x2e   : > { %1173 = vmatprep.subr.mxu0 %v1365_v20  ;;  %v254_v25 = vadd.s32 4294967288, %v249_v23  ;;  %v261_v28 = vadd.s32 4294967280, %v249_v23  ;;  %v252_v29 = vsub.s32 %v249_v23, %v1485_v24  ;;  %1179 = vmatpush3.msk.msra.mxu1 %vm225_vm0, %v370_v50  ;;  %v1213_v54 = vld [vmem:[#allocation2] ss:$8 sps:$4 sm:$0xff]   ;;  %v1215_v55 = vld [vmem:[#allocation2 + $0x4] ss:$8 sps:$4 sm:$0xff]  }
  0x2f   : > { %s207_s10 = scalar_lea.vmem %s1548_s0, %s1188_s7  ;;  %v1216_v56 = vld [vmem:[#allocation2 + $0x100] ss:$8 sps:$4 sm:$0xff]   ;;  %v1218_v57 = vld [vmem:[#allocation2 + $0x104] ss:$8 sps:$4 sm:$0xff]   ;;  %v1221_v58 = vld [vmem:[#allocation2 + $0x14] ss:$8 sps:$4 sm:$0xff]   ;;  %s212_s23 = scalar_lea.vmem %s1552_s4, %s1188_s7 }
  0x30   : > { %v1447_v0 = vld [vmem:[%s207_s10] sm:$0xff]  ;;  %v1449_v1 = vld [vmem:[%s207_s10 + $0x8] sm:$0xff]  ;;  %v1451_v2 = vld [vmem:[%s207_s10 + $0x10] sm:$0xff]  ;;  %v257_v31 = vsub.s32 %v254_v25, %v1485_v24  ;;  %v264_v33 = vsub.s32 %v261_v28, %v1485_v24  ;;  %946 = vmatprep.subr.bf16.mxu1 %v1218_v57 }
  0x31   : > { %v219_v3 = vadd.f32 %v1449_v1, %v1447_v0  ;;  %v234_v4 = vmax.f32 %v1447_v0, %v1449_v1  ;;  %v1457_v5 = vld [vmem:[%s207_s10 + $0x18] sm:$0xff]  ;;  %v1459_v6 = vld [vmem:[%s207_s10 + $0x20] sm:$0xf]  ;;  %v1461_v7 = vld [vmem:[%s207_s10 + $0x28] sm:$0xf]  ;;  %1174 = vmatpush3.msk.msra.mxu0 %vm225_vm0, %v291_v21 }
  0x32   : > { %v226_v8 = vsel %vm225_vm0, %v1459_v6, 0.0  ;;  %v227_v9 = vsel %vm225_vm0, %v1461_v7, 0.0  ;;  %v222_v10 = vadd.f32 %v1457_v5, %v1451_v2  ;;  %v240_v12 = vsel %vm225_vm0, %v1459_v6, -inf  ;;  %905 = vmatprep.subr.bf16.mxu0 %v1215_v55  ;;  %v1224_v59 = vld [vmem:[#allocation2 + $0x114] ss:$8 sps:$4 sm:$0xff]  }
  0x33   : > { %220 = vadd.xlane.f32.xlu0 %v219_v3  ;;  %235 = vmax.xlane.f32.xlu1 %v234_v4  ;;  %v228_v11 = vadd.f32 %v227_v9, %v226_v8  ;;  %v241_v13 = vsel %vm225_vm0, %v1461_v7, -inf  ;;  %v237_v14 = vmax.f32 %v1451_v2, %v1457_v5  ;;  %v1219_v60 = vld [vmem:[#allocation2 + $0x10] ss:$8 sps:$4 sm:$0xff]   ;;  %v1227_v62 = vld [vmem:[#allocation2 + $0x24] ss:$8 sps:$4 sm:$0xff]  }
  0x34   : > { %v242_v15 = vmax.f32 %v240_v12, %v241_v13  ;;  %v1222_v61 = vld [vmem:[#allocation2 + $0x110] ss:$8 sps:$4 sm:$0xff]   ;;  %v1230_v63 = vld [vmem:[#allocation2 + $0x124] ss:$8 sps:$4 sm:$0xff]   ;;  %v1225_v3 = vld [vmem:[#allocation2 + $0x20] ss:$8 sps:$4 sm:$0xff]  }
  0x35   : > { %v1228_v4 = vld [vmem:[#allocation2 + $0x120] ss:$8 sps:$4 sm:$0xff]   ;;  %v1233_v8 = vld [vmem:[#allocation2 + $0x34] ss:$8 sps:$4 sm:$0xff]   ;;  %v1239_v12 = vld [vmem:[#allocation2 + $0x44] ss:$8 sps:$4 sm:$0xff]  }
  0x36   : > { %v1236_v9 = vld [vmem:[#allocation2 + $0x134] ss:$8 sps:$4 sm:$0xff]   ;;  %v1242_v13 = vld [vmem:[#allocation2 + $0x144] ss:$8 sps:$4 sm:$0xff]   ;;  %v1243_v18 = vld [vmem:[#allocation2 + $0x50] ss:$8 sps:$4 sm:$0xff]  }
  0x37   : > { %223 = vadd.xlane.f32.xlu0 %v222_v10  ;;  %229 = vadd.xlane.f32.xlu1 %v228_v11  ;;  %v1231_v10 = vld [vmem:[#allocation2 + $0x30] ss:$8 sps:$4 sm:$0xff]   ;;  %v1245_v16 = vld [vmem:[#allocation2 + $0x54] ss:$8 sps:$4 sm:$0xff]   ;;  %v1251_v20 = vld [vmem:[#allocation2 + $0x64] ss:$8 sps:$4 sm:$0xff]  }
  0x38   : > { %v1234_v11 = vld [vmem:[#allocation2 + $0x130] ss:$8 sps:$4 sm:$0xff]   ;;  %v1248_v17 = vld [vmem:[#allocation2 + $0x154] ss:$8 sps:$4 sm:$0xff]   ;;  %v1254_v21 = vld [vmem:[#allocation2 + $0x164] ss:$8 sps:$4 sm:$0xff]  }
  0x39   : > { %v1246_v19 = vld [vmem:[#allocation2 + $0x150] ss:$8 sps:$4 sm:$0xff]   ;;  %v1249_v22 = vld [vmem:[#allocation2 + $0x60] ss:$8 sps:$4 sm:$0xff]   ;;  %v1257_v25 = vld [vmem:[#allocation2 + $0x74] ss:$8 sps:$4 sm:$0xff]  }
  0x3a   : > { %v1252_v23 = vld [vmem:[#allocation2 + $0x160] ss:$8 sps:$4 sm:$0xff]   ;;  %v1258_v28 = vld [vmem:[#allocation2 + $0x170] ss:$8 sps:$4 sm:$0xff]   ;;  %v1284_v50 = vld [vmem:[#allocation2 + $0x1b4] ss:$8 sps:$4 sm:$0xff]  }
  0x3b   : > { %238 = vmax.xlane.f32.xlu0 %v237_v14  ;;  %243 = vmax.xlane.f32.xlu1 %v242_v15  ;;  %v1237_v14 = vld [vmem:[#allocation2 + $0x40] ss:$8 sps:$4 sm:$0xff]   ;;  %v1290_v55 = vld [vmem:[#allocation2 + $0x1c4] ss:$8 sps:$4 sm:$0xff]  }
  0x3c   : > { %v1240_v15 = vld [vmem:[#allocation2 + $0x140] ss:$8 sps:$4 sm:$0xff]  }
  0x3d   : > { %v1288_v57 = vld [vmem:[#allocation2 + $0x1c0] ss:$8 sps:$4 sm:$0xff]  }
  0xc0   : > { %v221_v26 = vpop.xlane.xlu0 %220  ;;  %v236_v27 = vpop.xlane.xlu1 %235 }
  0xc1   : > { %v231_v30 = vmul.f32 0.00390625, %v221_v26  ;;  %v275_v42 = vrot.slane %v236_v27, %v252_v29  ;;  %v1260_v26 = vld [vmem:[#allocation2 + $0x174] ss:$8 sps:$4 sm:$0xff]   ;;  %v1255_v27 = vld [vmem:[#allocation2 + $0x70] ss:$8 sps:$4 sm:$0xff]  }
  0xc3   : > { %v253_v37 = vrot.slane %v231_v30, %v252_v29  ;;  %v1263_v29 = vld [vmem:[#allocation2 + $0x84] ss:$8 sps:$4 sm:$0xff]  }
  0xc4   : > { %v224_v32 = vpop.xlane.xlu0 %223  ;;  %v230_v34 = vpop.xlane.xlu1 %229  ;;  %v1266_v30 = vld [vmem:[#allocation2 + $0x184] ss:$8 sps:$4 sm:$0xff]  }
  0xc5   : > { %v232_v35 = vmul.f32 0.00390625, %v224_v32  ;;  %v233_v36 = vmul.f32 0.00390625, %v230_v34  ;;  %v1264_v32 = vld [vmem:[#allocation2 + $0x180] ss:$8 sps:$4 sm:$0xff]   ;;  %v1272_v34 = vld [vmem:[#allocation2 + $0x194] ss:$8 sps:$4 sm:$0xff]  }
  0xc7   : > { %v258_v38 = vrot.slane %v232_v35, %v257_v31  ;;  %v265_v39 = vrot.slane %v233_v36, %v264_v33  ;;  %v1267_v35 = vld [vmem:[#allocation2 + $0x90] ss:$8 sps:$4 sm:$0xff]  }
  0xc8   : > { %v239_v40 = vpop.xlane.xlu0 %238  ;;  %v244_v41 = vpop.xlane.xlu1 %243  ;;  %v1270_v36 = vld [vmem:[#allocation2 + $0x190] ss:$8 sps:$4 sm:$0xff]  }
  0xc9   : > { %v260_v43 = vsel %vm259_vm2, %v258_v38, %v253_v37  ;;  %v279_v44 = vrot.slane %v239_v40, %v257_v31  ;;  %v284_v45 = vrot.slane %v244_v41, %v264_v33  ;;  %v1261_v31 = vld [vmem:[#allocation2 + $0x80] ss:$8 sps:$4 sm:$0xff]   ;;  %v1269_v33 = vld [vmem:[#allocation2 + $0x94] ss:$8 sps:$4 sm:$0xff]  }
  0xca   : > { %v267_v48 = vsel %vm266_vm3, %v265_v39, %v260_v43 }
  0xcb   : > { %v280_v46 = vsel %vm259_vm2, %v279_v44, %v275_v42 }
  0xcc   : > { %v285_v47 = vsel %vm266_vm3, %v284_v45, %v280_v46  ;;  %v1275_v45 = vld [vmem:[#allocation2 + $0xa4] ss:$8 sps:$4 sm:$0xff]  }
  0xcd   : > { %v288_v49 = vsel %vm287_vm4, %v267_v48, %v285_v47  ;;  %v1278_v46 = vld [vmem:[#allocation2 + $0x1a4] ss:$8 sps:$4 sm:$0xff]   ;;  %v1273_v47 = vld [vmem:[#allocation2 + $0xa0] ss:$8 sps:$4 sm:$0xff]  }
  0xce   : > { %1176 = vmatmul.mubr.msk.f32.vlgmr.msra.gmra.mrb[0].mxu0 %vm292_vm5, %v288_v49  ;;  %v1276_v48 = vld [vmem:[#allocation2 + $0x1a0] ss:$8 sps:$4 sm:$0xff]   ;;  %v1281_v49 = vld [vmem:[#allocation2 + $0xb4] ss:$8 sps:$4 sm:$0xff]  }
  0xcf   : > { %906 = vmatpush1.bf16.msra.mxu0 %v1213_v54  ;;  %v1287_v54 = vld [vmem:[#allocation2 + $0xc4] ss:$8 sps:$4 sm:$0xff]  }
  0xd0   : > { %907 = vmatprep.subr.bf16.mxu0 %v1221_v58 }
  0xd3   : > { %908 = vmatpush1.bf16.msra.mxu0 %v1219_v60  ;;  %v1293_v60 = vld [vmem:[#allocation2 + $0xd4] ss:$8 sps:$4 sm:$0xff]  }
  0xd4   : > { %909 = vmatprep.subr.bf16.mxu0 %v1227_v62  ;;  %v1291_v62 = vld [vmem:[#allocation2 + $0xd0] ss:$8 sps:$4 sm:$0xff]  }
  0xd7   : > { %910 = vmatpush1.bf16.msra.mxu0 %v1225_v3  ;;  %v1299_v3 = vld [vmem:[#allocation2 + $0xe4] ss:$8 sps:$4 sm:$0xff]  }
  0xd8   : > { %911 = vmatprep.subr.bf16.mxu0 %v1233_v8  ;;  %v1302_v8 = vld [vmem:[#allocation2 + $0x1e4] ss:$8 sps:$4 sm:$0xff]  }
  0xdb   : > { %912 = vmatpush1.bf16.msra.mxu0 %v1231_v10  ;;  %v1308_v10 = vld [vmem:[#allocation2 + $0x1f4] ss:$8 sps:$4 sm:$0xff]  }
  0xdc   : > { %913 = vmatprep.subr.bf16.mxu0 %v1239_v12  ;;  %v1306_v12 = vld [vmem:[#allocation2 + $0x1f0] ss:$8 sps:$4 sm:$0xff]  }
  0xdf   : > { %914 = vmatpush1.bf16.msra.mxu0 %v1237_v14 }
  0xe0   : > { %915 = vmatprep.subr.bf16.mxu0 %v1245_v16 }
  0xe3   : > { %916 = vmatpush1.bf16.msra.mxu0 %v1243_v18 }
  0xe4   : > { %917 = vmatprep.subr.bf16.mxu0 %v1251_v20 }
  0xe7   : > { %918 = vmatpush1.bf16.msra.mxu0 %v1249_v22 }
  0xe8   : > { %919 = vmatprep.subr.bf16.mxu0 %v1257_v25 }
  0xeb   : > { %920 = vmatpush1.bf16.msra.mxu0 %v1255_v27 }
  0xec   : > { %921 = vmatprep.subr.bf16.mxu0 %v1263_v29 }
  0xef   : > { %922 = vmatpush1.bf16.msra.mxu0 %v1261_v31 }
  0xf0   : > { %923 = vmatprep.subr.bf16.mxu0 %v1269_v33 }
  0xf3   : > { %924 = vmatpush1.bf16.msra.mxu0 %v1267_v35 }
  0xf4   : > { %925 = vmatprep.subr.bf16.mxu0 %v1275_v45 }
  0xf7   : > { %926 = vmatpush1.bf16.msra.mxu0 %v1273_v47 }
  0xf8   : > { %927 = vmatprep.subr.bf16.mxu0 %v1281_v49 }
 0x1a1   : > { %v365_v51 = vpop.f32.mrb[0].mxu0 }
 0x1a2   : > { %v369_v52 = vmax.f32 %v365_v51, 0.0  ;;  %v1177_v53 = vpop.f32.mrb[1].mxu0  ;;  %v1279_v51 = vld [vmem:[#allocation2 + $0xb0] ss:$8 sps:$4 sm:$0xff]  }
 0x1a3   : > { %v1495_v53 = vsub.s32 0, %v1485_v24  ;;  %928 = vmatpush1.bf16.msra.mxu0 %v1279_v51  ;;  %v1294_v24 = vld [vmem:[#allocation2 + $0x1d0] ss:$8 sps:$4 sm:$0xff]  }
 0x1a4   : > { %1181 = vmatmul.mubr.msk.f32.vlgmr.msra.gmra.mrb[0].mxu1 %vm371_vm6, %v369_v52  ;;  %v1282_v52 = vld [vmem:[#allocation2 + $0x1b0] ss:$8 sps:$4 sm:$0xff]   ;;  %929 = vmatprep.subr.bf16.mxu0 %v1287_v54 }
 0x1a5   : > { %947 = vmatpush1.bf16.msra.mxu1 %v1216_v56  ;;  %v1285_v56 = vld [vmem:[#allocation2 + $0xc0] ss:$8 sps:$4 sm:$0xff]  }
 0x1a6   : > { %948 = vmatprep.subr.bf16.mxu1 %v1224_v59 }
 0x1a7   : > { %930 = vmatpush1.bf16.msra.mxu0 %v1285_v56 }
 0x1a8   : > { %931 = vmatprep.subr.bf16.mxu0 %v1293_v60 }
 0x1a9   : > { %949 = vmatpush1.bf16.msra.mxu1 %v1222_v61  ;;  %v1296_v61 = vld [vmem:[#allocation2 + $0x1d4] ss:$8 sps:$4 sm:$0xff]  }
 0x1aa   : > { %950 = vmatprep.subr.bf16.mxu1 %v1230_v63  ;;  %v1297_v63 = vld [vmem:[#allocation2 + $0xe0] ss:$8 sps:$4 sm:$0xff]  }
 0x1ab   : > { %932 = vmatpush1.bf16.msra.mxu0 %v1291_v62 }
 0x1ac   : > { %933 = vmatprep.subr.bf16.mxu0 %v1299_v3 }
 0x1ad   : > { %951 = vmatpush1.bf16.msra.mxu1 %v1228_v4  ;;  %v1300_v4 = vld [vmem:[#allocation2 + $0x1e0] ss:$8 sps:$4 sm:$0xff]  }
 0x1ae   : > { %952 = vmatprep.subr.bf16.mxu1 %v1236_v9  ;;  %v1305_v9 = vld [vmem:[#allocation2 + $0xf4] ss:$8 sps:$4 sm:$0xff]  }
 0x1af   : > { %934 = vmatpush1.bf16.msra.mxu0 %v1297_v63 }
 0x1b0   : > { %935 = vmatprep.subr.bf16.mxu0 %v1305_v9 }
 0x1b1   : > { %953 = vmatpush1.bf16.msra.mxu1 %v1234_v11  ;;  %v1303_v11 = vld [vmem:[#allocation2 + $0xf0] ss:$8 sps:$4 sm:$0xff]  }
 0x1b2   : > { %954 = vmatprep.subr.bf16.mxu1 %v1242_v13 }
 0x1b3   : > { %936 = vmatpush1.bf16.msra.mxu0 %v1303_v11 }
 0x1b5   : > { %955 = vmatpush1.bf16.msra.mxu1 %v1240_v15 }
 0x1b6   : > { %956 = vmatprep.subr.bf16.mxu1 %v1248_v17 }
 0x1b9   : > { %957 = vmatpush1.bf16.msra.mxu1 %v1246_v19 }
 0x1ba   : > { %958 = vmatprep.subr.bf16.mxu1 %v1254_v21 }
 0x1bd   : > { %959 = vmatpush1.bf16.msra.mxu1 %v1252_v23 }
 0x1be   : > { %960 = vmatprep.subr.bf16.mxu1 %v1260_v26 }
 0x1c1   : > { %961 = vmatpush1.bf16.msra.mxu1 %v1258_v28 }
 0x1c2   : > { %962 = vmatprep.subr.bf16.mxu1 %v1266_v30 }
 0x1c5   : > { %963 = vmatpush1.bf16.msra.mxu1 %v1264_v32 }
 0x1c6   : > { %964 = vmatprep.subr.bf16.mxu1 %v1272_v34 }
 0x1c9   : > { %965 = vmatpush1.bf16.msra.mxu1 %v1270_v36 }
 0x1ca   : > { %966 = vmatprep.subr.bf16.mxu1 %v1278_v46 }
 0x1cd   : > { %967 = vmatpush1.bf16.msra.mxu1 %v1276_v48 }
 0x1ce   : > { %968 = vmatprep.subr.bf16.mxu1 %v1284_v50 }
 0x1d1   : > { %969 = vmatpush1.bf16.msra.mxu1 %v1282_v52 }
 0x1d2   : > { %970 = vmatprep.subr.bf16.mxu1 %v1290_v55 }
 0x1d5   : > { %971 = vmatpush1.bf16.msra.mxu1 %v1288_v57 }
 0x1d6   : > { %972 = vmatprep.subr.bf16.mxu1 %v1296_v61 }
 0x1d9   : > { %973 = vmatpush1.bf16.msra.mxu1 %v1294_v24 }
 0x1da   : > { %974 = vmatprep.subr.bf16.mxu1 %v1302_v8 }
 0x1dd   : > { %975 = vmatpush1.bf16.msra.mxu1 %v1300_v4 }
 0x1de   : > { %976 = vmatprep.subr.bf16.mxu1 %v1308_v10 }
 0x1e1   : > { %977 = vmatpush1.bf16.msra.mxu1 %v1306_v12 }
 0x277   : > { %v444_v37 = vpop.f32.mrb[0].mxu1 }
 0x278   : > { %v449_v38 = vrot.slane %v444_v37, 1  ;;  %v1182_v39 = vpop.f32.mrb[1].mxu1 }
 0x27a   : > { %v451_v40 = vadd.f32 %v449_v38, %v444_v37 }
 0x27c   : > { %v452_v41 = vsub.f32 0.0, %v451_v40 }
 0x27e   : > { %v453_v42 = vmul.f32 1.442695, %v452_v41 }
 0x280   : > { %1309 = vpow2.f32 %v453_v42 }
 0x28a   : > { %v1310_v43 = vpop.eup %1309 }
 0x28b   : > { %v455_v44 = vadd.f32 1.0, %v1310_v43 }
 0x28d   : > { %1311 = vrcp.f32 %v455_v44 }
 0x297   : > { %v1312_v58 = vpop.eup %1311 }
 0x298   : > { %v461_v59 = vrot.slane %v1312_v58, %v1495_v53 }
 0x29a   : > { %467 = vbcast.lane.b32.xlu1 %v461_v59, 264  ;;  %463 = vbcast.lane.b32.xlu0 %v461_v59, 256 }
 0x29e   : > { %471 = vbcast.lane.b32.xlu1 %v461_v59, 272 }
 0x30c   : > { %v468_v13 = vpop.permute.xlu1 %467  ;;  %v464_v14 = vpop.permute.xlu0 %463 }
 0x30d   : > { %v1499_v15 = vmul.f32 %v468_v13, %v1451_v2  ;;  %v1502_v16 = vmul.f32 %v468_v13, %v1457_v5  ;;  %v1505_v17 = vmul.f32 %v464_v14, %v1447_v0  ;;  %v1508_v18 = vmul.f32 %v464_v14, %v1449_v1 }
 0x30f   : > { %v479_v2 = vadd.f32 %v1499_v15, %v1505_v17  ;;  %v488_v5 = vadd.f32 %v1502_v16, %v1508_v18 }
 0x310   : > { %v472_v19 = vpop.permute.xlu1 %471 }
 0x311   : > { %v1511_v20 = vmul.f32 %v472_v19, %v1459_v6  ;;  %v1514_v21 = vmul.f32 %v472_v19, %v1461_v7 }
 0x313   : > { %v480_v0 = vsel %vm225_vm0, %v1511_v20, 0.0  ;;  %v489_v1 = vsel %vm225_vm0, %v1514_v21, 0.0  ;;  %v499_v22 = vsel %vm225_vm0, %v1511_v20, -inf  ;;  %v508_v6 = vsel %vm225_vm0, %v1514_v21, -inf }
 0x314   : > { %v481_v7 = vadd.f32 %v480_v0, %v479_v2  ;;  %v490_v23 = vadd.f32 %v489_v1, %v488_v5  ;;  %v500_v25 = vmax.f32 %v1505_v17, %v499_v22  ;;  %v509_v26 = vmax.f32 %v1508_v18, %v508_v6 }
 0x316   : > { %v482_v27 = vrot.slane %v481_v7, 4  ;;  %v491_v28 = vrot.slane %v490_v23, 4  ;;  %v501_v29 = vmax.f32 %v500_v25, %v1499_v15  ;;  %v510_v30 = vmax.f32 %v509_v26, %v1502_v16 }
 0x318   : > { %v483_v31 = vadd.f32 %v482_v27, %v481_v7  ;;  %v492_v32 = vadd.f32 %v491_v28, %v490_v23  ;;  %v502_v33 = vrot.slane %v501_v29, 4  ;;  %v511_v34 = vrot.slane %v510_v30, 4 }
 0x31a   : > { %v484_v35 = vrot.slane %v483_v31, 2  ;;  %v503_v36 = vmax.f32 %v501_v29, %v502_v33  ;;  %v493_v37 = vrot.slane %v492_v32, 2  ;;  %v512_v38 = vmax.f32 %v510_v30, %v511_v34 }
 0x31c   : > { %v485_v39 = vadd.f32 %v484_v35, %v483_v31  ;;  %v494_v40 = vadd.f32 %v493_v37, %v492_v32  ;;  %v513_v41 = vrot.slane %v512_v38, 2  ;;  %v504_v42 = vrot.slane %v503_v36, 2 }
 0x31e   : > { %v495_v43 = vrot.slane %v494_v40, 1  ;;  %v514_v44 = vmax.f32 %v512_v38, %v513_v41  ;;  %v486_v45 = vrot.slane %v485_v39, 1  ;;  %v505_v46 = vmax.f32 %v503_v36, %v504_v42 }
 0x320   : > { %v496_v47 = vadd.f32 %v495_v43, %v494_v40  ;;  %v515_v48 = vrot.slane %v514_v44, 1  ;;  %v487_v49 = vadd.f32 %v486_v45, %v485_v39  ;;  %v506_v50 = vrot.slane %v505_v46, 1 }
 0x322   : > { %v498_v51 = vmul.f32 0.05, %v496_v47  ;;  %v516_v52 = vmax.f32 %v514_v44, %v515_v48  ;;  %v497_v54 = vmul.f32 0.05, %v487_v49  ;;  %v507_v55 = vmax.f32 %v505_v46, %v506_v50 }
 0x324   : > { %v518_v56 = vpack.c.bf16 %v498_v51, %v498_v51  ;;  %v520_v57 = vpack.c.bf16 %v516_v52, %v516_v52  ;;  %v517_v58 = vpack.c.bf16 %v497_v54, %v497_v54  ;;  %v519_v59 = vpack.c.bf16 %v507_v55, %v507_v55 }
 0x326   : > { %937 = vmatprep.mubr.bf16.mxu0 %v518_v56  ;;  %978 = vmatprep.mubr.bf16.mxu1 %v520_v57 }
 0x327   : > { %938 = vmatmul.mubr.bf16.vlgmr.msra.gmra.mrb[4].mxu0 %v517_v58  ;;  %979 = vmatmul.mubr.bf16.vlgmr.msra.gmra.mrb[4].mxu1 %v519_v59 }
 0x3fa   : > { %v939_v60 = vpop.f32.mrb[4].mxu0  ;;  %v980_v61 = vpop.f32.mrb[4].mxu1 }
 0x3fb   : > { %v981_v62 = vadd.f32 %v980_v61, %v939_v60  ;;  %v941_v24 = vpop.f32.mrb[5].mxu0  ;;  %v982_v63 = vpop.f32.mrb[5].mxu1 }
 0x3fc   : > { %v983_v3 = vadd.f32 %v982_v63, %v941_v24  ;;  %v943_v4 = vpop.f32.mrb[6].mxu0  ;;  %v984_v8 = vpop.f32.mrb[6].mxu1 }
 0x3fd   : > { %v987_v9 = vsub.f32 0.0, %v981_v62  ;;  %v944_v10 = vpop.f32.mrb[7].mxu0  ;;  %v985_v11 = vpop.f32.mrb[7].mxu1 }
 0x3fe   : > { %v988_v12 = vsub.f32 0.0, %v983_v3 }
 0x3ff   : > { %v989_v13 = vmul.f32 1.442695, %v987_v9 }
 0x400   : > { %v991_v14 = vmul.f32 1.442695, %v988_v12 }
 0x401   : > { %1313 = vpow2.f32 %v989_v13 }
 0x402   : > { %1315 = vpow2.f32 %v991_v14 }
 0x40b   : > { %v1314_v19 = vpop.eup %1313 }
 0x40c   : > { %v1316_v2 = vpop.eup %1315  ;;  %v993_v5 = vadd.f32 1.0, %v1314_v19 }
 0x40d   : > { %v994_v0 = vadd.f32 1.0, %v1316_v2 }
 0x40e   : > { %1317 = vrcp.f32 %v993_v5 }
 0x40f   : > { %1319 = vrcp.f32 %v994_v0 }
 0x418   : > { %v1318_v1 = vpop.eup %1317 }
 0x419   : > { %v1320_v22 = vpop.eup %1319  ;;  %v1000_v6 = vrot.slane %v1318_v1, %v1495_v53 }
 0x41a   : > { %v1004_v7 = vrot.slane %v1320_v22, %v1495_v53 }
 0x41b   : > { %v1005_v23 = vmul.f32 %v1000_v6, %v1505_v17  ;;  %v1007_v25 = vmul.f32 %v1000_v6, %v1499_v15  ;;  %v1009_v26 = vmul.f32 %v1000_v6, %v1511_v20 }
 0x41c   : > { %v1006_v27 = vmul.f32 %v1004_v7, %v1508_v18  ;;  %v1008_v28 = vmul.f32 %v1004_v7, %v1502_v16  ;;  %v1010_v29 = vmul.f32 %v1004_v7, %v1514_v21 }
 0x41d   : > { %1011 = vst [vmem:[%s212_s23] sm:$0xff] %v1005_v23  ;;  %1013 = vst [vmem:[%s212_s23 + $0x10] sm:$0xff] %v1007_v25 }
 0x41e   : > { %1015 = vst [vmem:[%s212_s23 + $0x20] sm:$0xf] %v1009_v26  ;;  %1012 = vst [vmem:[%s212_s23 + $0x8] sm:$0xff] %v1006_v27 }
 0x41f   : > { %1014 = vst [vmem:[%s212_s23 + $0x18] sm:$0xff] %v1008_v28  ;;  %1016 = vst [vmem:[%s212_s23 + $0x28] sm:$0xf] %v1010_v29 }
 0x420 PF: > { %s15_s15 = sadd.s32 1, %s1359_s15  }
 0x421   : > { %p12_p3 = scmp.ge.s32.totalorder %s15_s15, 4  }
 0x423   :  { %14 = sbr.rel (!%p12_p3) target bundleno = 1 (0x1), region = 71 }
 0x42a   :  { %1038 = vsyncpa [#allocation3], 1 }
 0x42b   :  { %1040 = vsyncpa [#allocation3 + $0x1], 1 }

</bundles_post_ra>
